<compile_context>
chip_gen: v7x
topology: tpu7x:2x2x1
jax: 0.10.0
libtpu: 0.0.40
codegen_flags: <defaults>
</compile_context>

<pallas_src>
import jax
import jax.numpy as jnp
from jax.experimental import pallas as pl
from jax.experimental.pallas import tpu as pltpu


def _round_up(x, m):
    return ((x + m - 1) // m) * m


def _ffn_kernel(x_ref, w1_ref, w3_ref, w2_ref, o_ref, acc_ref):
    # x_ref : (tm, dim_p)   bf16 token tile
    # w1_ref: (dim_p, th)   w3_ref: (dim_p, th)   w2_ref: (th, dim_p)   (bf16 slices)
    # acc_ref: (tm, dim_p)  f32 accumulator carried across the hidden axis
    h = pl.program_id(1)

    @pl.when(h == 0)
    def _():
        acc_ref[...] = jnp.zeros_like(acc_ref)

    x = x_ref[...]
    # MXU consumes bf16 operands natively; accumulate in f32 via preferred_element_type.
    h1 = jnp.dot(x, w1_ref[...], preferred_element_type=jnp.float32)
    h3 = jnp.dot(x, w3_ref[...], preferred_element_type=jnp.float32)
    gated = (h1 * jax.nn.sigmoid(h1)) * h3          # SiLU gate, f32 VPU/EUP math
    acc_ref[...] += jnp.dot(gated.astype(w2_ref.dtype), w2_ref[...],
                            preferred_element_type=jnp.float32)

    @pl.when(h == pl.num_programs(1) - 1)
    def _():
        o_ref[...] = acc_ref[...].astype(o_ref.dtype)
    # TODO(synk): nn.Dropout is identity in eval mode; training-mode dropout
    # (pltpu.prng_random_bits mask on the accumulator before the final store) omitted.


def prepare_ffn_params(w1, w2, w3, *, compute_dtype=jnp.bfloat16, lane=128, th=512):
    """One-time parameter prep (do NOT call per forward): transpose PyTorch-layout
    weights to [in, out], zero-pad to lane-aligned shapes, cast to the MXU dtype."""
    hidden, dim = w1.shape
    dim_p = _round_up(dim, lane)
    th = min(th, _round_up(hidden, lane))      # hidden-tile width (multiple of 128)
    hidden_p = _round_up(hidden, th)

    def pad_to(a, shape):
        return jnp.pad(a, [(0, s - d) for d, s in zip(a.shape, shape)])

    w1_t = pad_to(w1.T, (dim_p, hidden_p)).astype(compute_dtype)   # (dim_p, hidden_p)
    w3_t = pad_to(w3.T, (dim_p, hidden_p)).astype(compute_dtype)   # (dim_p, hidden_p)
    w2_t = pad_to(w2.T, (hidden_p, dim_p)).astype(compute_dtype)   # (hidden_p, dim_p)
    return dict(w1_t=w1_t, w3_t=w3_t, w2_t=w2_t, dim=dim, hidden=hidden,
                dim_p=dim_p, hidden_p=hidden_p, th=th, compute_dtype=compute_dtype)


def feed_forward(x, params, *, tm=256):
    """x: [batch, seq, dim] -> [batch, seq, dim] using pre-prepared params."""
    B, S, dim = x.shape
    assert dim == params["dim"]
    dim_p, hidden_p, th = params["dim_p"], params["hidden_p"], params["th"]
    cdt = params["compute_dtype"]

    M = B * S
    # MXU-aligned token tile; cap for tiny inputs (still a multiple of 8 sublanes).
    tm = min(tm, _round_up(M, 8))
    M_p = _round_up(M, tm)

    x2d = jnp.pad(x.reshape(M, dim), ((0, M_p - M), (0, dim_p - dim))).astype(cdt)

    grid = (M_p // tm, hidden_p // th)

    out2d = pl.pallas_call(
        _ffn_kernel,
        out_shape=jax.ShapeDtypeStruct((M_p, dim_p), x.dtype),
        grid_spec=pltpu.PrefetchScalarGridSpec(
            num_scalar_prefetch=0,
            grid=grid,
            in_specs=[
                pl.BlockSpec((tm, dim_p), lambda i, h: (i, 0)),   # x tile (re-used over h)
                pl.BlockSpec((dim_p, th), lambda i, h: (0, h)),   # w1 hidden-slice
                pl.BlockSpec((dim_p, th), lambda i, h: (0, h)),   # w3 hidden-slice
                pl.BlockSpec((th, dim_p), lambda i, h: (h, 0)),   # w2 hidden-slice
            ],
            out_specs=pl.BlockSpec((tm, dim_p), lambda i, h: (i, 0)),
            scratch_shapes=[pltpu.VMEM((tm, dim_p), jnp.float32)],
        ),
        compiler_params=pltpu.CompilerParams(
            dimension_semantics=("parallel", "arbitrary"),
            vmem_limit_bytes=48 * 1024 * 1024,   # safe on v5e/v6e (128 MiB) and v7x (64 MiB)
        ),
    )(x2d, params["w1_t"], params["w3_t"], params["w2_t"])

    return out2d[:M, :dim].reshape(B, S, dim)


def make_params(key, dim, hidden_dim, multiple_of):
    hidden = multiple_of * ((hidden_dim + multiple_of - 1) // multiple_of)
    k1, k2, k3 = jax.random.split(key, 3)
    # deterministic synthetic init (kaiming-uniform-ish scale), PyTorch Linear layout
    w1 = jax.random.uniform(k1, (hidden, dim), jnp.float32,
                            minval=-1.0, maxval=1.0) / jnp.sqrt(dim)
    w2 = jax.random.uniform(k2, (dim, hidden), jnp.float32,
                            minval=-1.0, maxval=1.0) / jnp.sqrt(hidden)
    w3 = jax.random.uniform(k3, (hidden, dim), jnp.float32,
                            minval=-1.0, maxval=1.0) / jnp.sqrt(dim)
    return w1, w2, w3


def _reference(x, w1, w2, w3, compute_dtype=jnp.bfloat16):
    # Matches the kernel's numerics: bf16 MXU operands, f32 accumulation, f32 SiLU.
    xc = x.astype(compute_dtype)
    h1 = jnp.dot(xc, w1.T.astype(compute_dtype), preferred_element_type=jnp.float32)
    h3 = jnp.dot(xc, w3.T.astype(compute_dtype), preferred_element_type=jnp.float32)
    g = h1 * jax.nn.sigmoid(h1) * h3
    out = jnp.dot(g.astype(compute_dtype), w2.T.astype(compute_dtype),
                  preferred_element_type=jnp.float32)
    return out.astype(x.dtype)


if __name__ == "__main__":
    key = jax.random.PRNGKey(0)
    kx, kp = jax.random.split(key)

    batch, seq, dim = 2, 8, 32
    hidden_dim, multiple_of, dropout = 48, 32, 0.0   # hidden rounds up to 64

    x = jax.random.normal(kx, (batch, seq, dim), jnp.float32)
    w1, w2, w3 = make_params(kp, dim, hidden_dim, multiple_of)

    params = prepare_ffn_params(w1, w2, w3)          # one-time transpose/pad/bf16 cast
    out = feed_forward(x, params)
    out = jax.block_until_ready(out)

    ref = _reference(x, w1, w2, w3)
    assert out.shape == (batch, seq, dim)
    assert jnp.allclose(out, ref, atol=1e-2, rtol=1e-2), float(jnp.max(jnp.abs(out - ref)))
    print("KERNEL_OK")
</pallas_src>

<mosaic_0001>
module attributes {stable_mosaic.version = 11 : i64} {
  func.func @_ffn_kernel(%arg0: i32, %arg1: i32, %arg2: memref<16x128xbf16, #tpu.memory_space<vmem>>, %arg3: memref<128x128xbf16, #tpu.memory_space<vmem>>, %arg4: memref<128x128xbf16, #tpu.memory_space<vmem>>, %arg5: memref<128x128xbf16, #tpu.memory_space<vmem>>, %arg6: memref<16x128xf32, #tpu.memory_space<vmem>>, %arg7: memref<16x128xf32, #tpu.memory_space<vmem>>) attributes {dimension_semantics = [#tpu.dimension_semantics<parallel>, #tpu.dimension_semantics<arbitrary>], iteration_bounds = array<i64: 1, 1>, scalar_prefetch = 0 : i64, scratch_operands = 1 : i64, tpu.core_type = #tpu.core_type<tc>, window_params = [{transform_indices = @transform_0, window_bounds = array<i64: 16, 128>}, {transform_indices = @transform_1, window_bounds = array<i64: 128, 128>}, {transform_indices = @transform_2, window_bounds = array<i64: 128, 128>}, {transform_indices = @transform_3, window_bounds = array<i64: 128, 128>}, {transform_indices = @transform_4, window_bounds = array<i64: 16, 128>}]} {
    %c0_i32 = arith.constant 0 : i32
    %0 = arith.cmpi eq, %arg1, %c0_i32 : i32
    %1 = arith.extui %0 : i1 to i32
    %c0_i32_0 = arith.constant 0 : i32
    %2 = arith.cmpi ne, %1, %c0_i32_0 : i32
    scf.if %2 {
      %cst_17 = arith.constant 0.000000e+00 : f32
      %24 = vector.broadcast %cst_17 : f32 to vector<16x128xf32>
      %c0_18 = arith.constant 0 : index
      %c0_19 = arith.constant 0 : index
      %25 = vector.load %arg7[%c0_18, %c0_19] : memref<16x128xf32, #tpu.memory_space<vmem>>, vector<16x128xf32>
      tpu.vector_store %arg7[%c0_18, %c0_19], %24 {strides = array<i32>} : memref<16x128xf32, #tpu.memory_space<vmem>>, vector<16x128xf32>,
    } else {
    }
    %c0 = arith.constant 0 : index
    %c0_1 = arith.constant 0 : index
    %3 = vector.load %arg2[%c0, %c0_1] : memref<16x128xbf16, #tpu.memory_space<vmem>>, vector<16x128xbf16>
    %c0_2 = arith.constant 0 : index
    %c0_3 = arith.constant 0 : index
    %4 = vector.load %arg3[%c0_2, %c0_3] : memref<128x128xbf16, #tpu.memory_space<vmem>>, vector<128x128xbf16>
    %cst = arith.constant dense<0.000000e+00> : vector<16x128xf32>
    %5 = tpu.matmul %3, %4, %cst {dimension_numbers = #tpu.dot_dimension_numbers<[1], [0], [0], [1], [0, 0, 1, 1], [], []>} : vector<16x128xbf16>, vector<128x128xbf16>, vector<16x128xf32> -> vector<16x128xf32>
    %c0_4 = arith.constant 0 : index
    %c0_5 = arith.constant 0 : index
    %6 = vector.load %arg4[%c0_4, %c0_5] : memref<128x128xbf16, #tpu.memory_space<vmem>>, vector<128x128xbf16>
    %cst_6 = arith.constant dense<0.000000e+00> : vector<16x128xf32>
    %7 = tpu.matmul %3, %6, %cst_6 {dimension_numbers = #tpu.dot_dimension_numbers<[1], [0], [0], [1], [0, 0, 1, 1], [], []>} : vector<16x128xbf16>, vector<128x128xbf16>, vector<16x128xf32> -> vector<16x128xf32>
    %8 = arith.negf %5 : vector<16x128xf32>
    %9 = math.exp %8 : vector<16x128xf32>
    %cst_7 = arith.constant 1.000000e+00 : f32
    %10 = vector.broadcast %cst_7 : f32 to vector<16x128xf32>
    %11 = arith.addf %10, %9 : vector<16x128xf32>
    %12 = arith.divf %10, %11 : vector<16x128xf32>
    %13 = arith.mulf %5, %12 : vector<16x128xf32>
    %14 = arith.mulf %13, %7 : vector<16x128xf32>
    %c0_8 = arith.constant 0 : index
    %c0_9 = arith.constant 0 : index
    %15 = vector.load %arg7[%c0_8, %c0_9] : memref<16x128xf32, #tpu.memory_space<vmem>>, vector<16x128xf32>
    %16 = arith.truncf %14 : vector<16x128xf32> to vector<16x128xbf16>
    %c0_10 = arith.constant 0 : index
    %c0_11 = arith.constant 0 : index
    %17 = vector.load %arg5[%c0_10, %c0_11] : memref<128x128xbf16, #tpu.memory_space<vmem>>, vector<128x128xbf16>
    %cst_12 = arith.constant dense<0.000000e+00> : vector<16x128xf32>
    %18 = tpu.matmul %16, %17, %cst_12 {dimension_numbers = #tpu.dot_dimension_numbers<[1], [0], [0], [1], [0, 0, 1, 1], [], []>} : vector<16x128xbf16>, vector<128x128xbf16>, vector<16x128xf32> -> vector<16x128xf32>
    %19 = arith.addf %15, %18 : vector<16x128xf32>
    %c0_13 = arith.constant 0 : index
    %c0_14 = arith.constant 0 : index
    %20 = vector.load %arg7[%c0_13, %c0_14] : memref<16x128xf32, #tpu.memory_space<vmem>>, vector<16x128xf32>
    tpu.vector_store %arg7[%c0_13, %c0_14], %19 {strides = array<i32>} : memref<16x128xf32, #tpu.memory_space<vmem>>, vector<16x128xf32>,
    %c0_i32_15 = arith.constant 0 : i32
    %21 = arith.cmpi eq, %arg1, %c0_i32_15 : i32
    %22 = arith.extui %21 : i1 to i32
    %c0_i32_16 = arith.constant 0 : i32
    %23 = arith.cmpi ne, %22, %c0_i32_16 : i32
    scf.if %23 {
      %c0_17 = arith.constant 0 : index
      %c0_18 = arith.constant 0 : index
      %24 = vector.load %arg7[%c0_17, %c0_18] : memref<16x128xf32, #tpu.memory_space<vmem>>, vector<16x128xf32>
      %c0_19 = arith.constant 0 : index
      %c0_20 = arith.constant 0 : index
      %25 = vector.load %arg6[%c0_19, %c0_20] : memref<16x128xf32, #tpu.memory_space<vmem>>, vector<16x128xf32>
      tpu.vector_store %arg6[%c0_19, %c0_20], %24 {strides = array<i32>} : memref<16x128xf32, #tpu.memory_space<vmem>>, vector<16x128xf32>,
    } else {
    }
    return
  }
  func.func @transform_0(%arg0: i32, %arg1: i32) -> (i32, i32) {
    %c0_i32 = arith.constant 0 : i32
    %c0_i32_0 = arith.constant 0 : i32
    return %arg0, %c0_i32 : i32, i32
  }
  func.func @transform_1(%arg0: i32, %arg1: i32) -> (i32, i32) {
    %c0_i32 = arith.constant 0 : i32
    %c0_i32_0 = arith.constant 0 : i32
    return %c0_i32, %arg1 : i32, i32
  }
  func.func @transform_2(%arg0: i32, %arg1: i32) -> (i32, i32) {
    %c0_i32 = arith.constant 0 : i32
    %c0_i32_0 = arith.constant 0 : i32
    return %c0_i32, %arg1 : i32, i32
  }
  func.func @transform_3(%arg0: i32, %arg1: i32) -> (i32, i32) {
    %c0_i32 = arith.constant 0 : i32
    %c0_i32_0 = arith.constant 0 : i32
    return %arg1, %c0_i32 : i32, i32
  }
  func.func @transform_4(%arg0: i32, %arg1: i32) -> (i32, i32) {
    %c0_i32 = arith.constant 0 : i32
    %c0_i32_0 = arith.constant 0 : i32
    return %arg0, %c0_i32 : i32, i32
  }
}

</mosaic_0001>

<bundles_post_ra>
// kernel: tpu_custom_call.1
= control target key start
LH: loop header
LB: loop body
LE: loop exit
PB: predicated region body
PF: predicated region fallthrough
CT: control target
= control target key end

     0   :  { %9 = vsyncpa [#allocation4], 0  ;;  %s880_s0 = inlined_call_operand.hbm [shape: bf16[16,128], index: 0, kind: input, shape index: {}]   ;;  %s881_s1 = inlined_call_operand.hbm [shape: bf16[128,128], index: 1, kind: input, shape index: {}]   ;;  %s882_s2 = inlined_call_operand.hbm [shape: bf16[128,128], index: 2, kind: input, shape index: {}]   ;;  %s883_s3 = inlined_call_operand.hbm [shape: bf16[128,128], index: 3, kind: input, shape index: {}]   ;;  %s884_s4 = inlined_call_operand.hbm [shape: f32[16,128], index: 4, kind: output, shape index: {}]  }
   0x1   :  { %10 = vsyncpa [#allocation7], 0 }
   0x2   :  { %11 = vsyncpa [#allocation10], 0 }
   0x3   :  { %12 = vsyncpa [#allocation5], 0  ;;  %s728_s15 = smov [#allocation6]   ;;  %s729_s17 = smov [#allocation3]  }
   0x4   :  { %s30_s16 = sshll.u32 %s728_s15, 4  ;;  %s18_s18 = sshll.u32 %s729_s17, 4  ;;  %s31_s16 = int_to_ptr.vmem [resolvable:$true] %s30_s16  ;;  %s764_s18 = int_to_ptr.vmem [resolvable:$true] %s18_s18 }
   0x5   :  { %s610_s21 = scalar_lea.hbm %s881_s1, 1024 }
   0x6   :  { %p611_p0 = scmp.ne.s32.totalorder %s881_s1, %s610_s21  ;;  %p614_p1 = scmp.lt.u32.totalorder %s610_s21, %s881_s1 }
   0x8   :  { %p616_p2 = pnand %p614_p1, %p611_p0 }
   0xa   :  { %619 = shalt.err (!%p616_p2)
}
   0xb   :  { %s620_s26 = scalar_lea.vmem %s31_s16, 1024  ;;  %p625_p4 = scmp.lt.s32.totalorder %s31_s16, %s31_s16 }
   0xc   :  { %p621_p3 = scmp.ne.s32.totalorder %s31_s16, %s620_s26  ;;  %p626_p5 = scmp.lt.s32.totalorder %s620_s26, %s620_s26 }
   0xe   :  { %p627_p6 = por %p626_p5, %p625_p4 }
  0x10   :  { %p628_p7 = pnand %p627_p6, %p621_p3 }
  0x12   :  { %631 = shalt.err (!%p628_p7)
}
  0x13   :  { %s730_s27 = smov 64   ;;  %s731_s28 = smov 4  }
  0x14   :  { %36 = dma.hbm_to_vmem [thread:$0]  %s881_s1, 1024, %s31_s16, [#allocation7], %s730_s27, %s730_s27, %s731_s28  }
  0x15   :  { %s632_s7 = scalar_lea.hbm %s880_s0, 128 }
  0x16   :  { %p633_p8 = scmp.ne.s32.totalorder %s880_s0, %s632_s7  ;;  %p636_p9 = scmp.lt.u32.totalorder %s632_s7, %s880_s0 }
  0x18   :  { %p638_p10 = pnand %p636_p9, %p633_p8 }
  0x1a   :  { %641 = shalt.err (!%p638_p10)
}
  0x1b   :  { %s642_s12 = scalar_lea.vmem %s764_s18, 128  ;;  %p647_p12 = scmp.lt.s32.totalorder %s764_s18, %s764_s18 }
  0x1c   :  { %p643_p11 = scmp.ne.s32.totalorder %s764_s18, %s642_s12  ;;  %p648_p13 = scmp.lt.s32.totalorder %s642_s12, %s642_s12 }
  0x1e   :  { %p649_p0 = por %p648_p13, %p647_p12 }
  0x20   :  { %p650_p1 = pnand %p649_p0, %p643_p11 }
  0x22   :  { %653 = shalt.err (!%p650_p1)
}
  0x23   :  { %24 = dma.hbm_to_vmem [thread:$0]  %s880_s0, 128, %s764_s18, [#allocation4], %s730_s27, %s730_s27, %s731_s28  }
  0x24   :  { %s732_s14 = smov [#allocation8]   ;;  %s733_s16 = smov [#allocation9]  }
  0x25   :  { %s42_s15 = sshll.u32 %s732_s14, 4  ;;  %s54_s17 = sshll.u32 %s733_s16, 4  ;;  %s43_s15 = int_to_ptr.vmem [resolvable:$true] %s42_s15  ;;  %s801_s17 = int_to_ptr.vmem [resolvable:$true] %s54_s17 }
  0x26   :  { %s654_s21 = scalar_lea.hbm %s882_s2, 1024 }
  0x27   :  { %p655_p2 = scmp.ne.s32.totalorder %s882_s2, %s654_s21  ;;  %p658_p3 = scmp.lt.u32.totalorder %s654_s21, %s882_s2 }
  0x29   :  { %p660_p4 = pnand %p658_p3, %p655_p2 }
  0x2b   :  { %663 = shalt.err (!%p660_p4)
}
  0x2c   :  { %s664_s0 = scalar_lea.vmem %s43_s15, 1024  ;;  %p669_p6 = scmp.lt.s32.totalorder %s43_s15, %s43_s15 }
  0x2d   :  { %p665_p5 = scmp.ne.s32.totalorder %s43_s15, %s664_s0  ;;  %p670_p7 = scmp.lt.s32.totalorder %s664_s0, %s664_s0 }
  0x2f   :  { %p671_p8 = por %p670_p7, %p669_p6 }
  0x31   :  { %p672_p9 = pnand %p671_p8, %p665_p5 }
  0x33   :  { %675 = shalt.err (!%p672_p9)
}
  0x34   :  { %48 = dma.hbm_to_vmem [thread:$0]  %s882_s2, 1024, %s43_s15, [#allocation7], %s730_s27, %s730_s27, %s731_s28  }
  0x35   :  { %s676_s5 = scalar_lea.hbm %s883_s3, 1024 }
  0x36   :  { %p677_p10 = scmp.ne.s32.totalorder %s883_s3, %s676_s5  ;;  %p680_p11 = scmp.lt.u32.totalorder %s676_s5, %s883_s3 }
  0x38   :  { %p682_p12 = pnand %p680_p11, %p677_p10 }
  0x3a   :  { %685 = shalt.err (!%p682_p12)
}
  0x3b   :  { %s686_s10 = scalar_lea.vmem %s801_s17, 1024  ;;  %p691_p0 = scmp.lt.s32.totalorder %s801_s17, %s801_s17 }
  0x3c   :  { %p687_p13 = scmp.ne.s32.totalorder %s801_s17, %s686_s10  ;;  %p692_p1 = scmp.lt.s32.totalorder %s686_s10, %s686_s10 }
  0x3e   :  { %p693_p2 = por %p692_p1, %p691_p0 }
  0x40   :  { %p694_p3 = pnand %p693_p2, %p687_p13 }
  0x42   :  { %697 = shalt.err (!%p694_p3)
}
  0x43   :  { %60 = dma.hbm_to_vmem [thread:$0]  %s883_s3, 1024, %s801_s17, [#allocation10], %s730_s27, %s730_s27, %s731_s28  }
  0x44   :  { %720 = dma.done.wait [#allocation4], 128  }
  0x45   :  { %721 = vsyncadd [#allocation4], 4294967168 }
  0x46   :  { %722 = dma.done.wait [#allocation7], 2048  }
  0x47   :  { %723 = vsyncadd [#allocation7], 4294965248 }
  0x48   :  { %724 = dma.done.wait [#allocation10], 1024  }
  0x49   :  { %725 = vsyncadd [#allocation10], 4294966272  ;;  %v734_v0 = vmov 0.0   ;;  %vm735_vm0 = vmmov 0   ;;  %v577_v1 = vld [vmem:[#allocation6] sm:$0xff]   ;;  %v578_v2 = vld [vmem:[#allocation6 + $0x8] sm:$0xff]  }
  0x4a   :  { %506 = vmatprep.subr.bf16.mxu0 %v734_v0  ;;  %526 = vmatprep.subr.bf16.mxu1 %v734_v0  ;;  %v579_v3 = vld [vmem:[#allocation6 + $0x10] sm:$0xff]   ;;  %v584_v4 = vld [vmem:[#allocation8] sm:$0xff]   ;;  %v586_v5 = vld [vmem:[#allocation8 + $0x8] sm:$0xff]   ;;  %s736_s3 = smov [#allocation11]  }
  0x4b   :  { %522 = vmatprep.mubr.msk.bf16.mxu0 %vm735_vm0, %v734_v0  ;;  %542 = vmatprep.mubr.msk.bf16.mxu1 %vm735_vm0, %v734_v0  ;;  %v580_v6 = vld [vmem:[#allocation6 + $0x18] sm:$0xff]   ;;  %v588_v7 = vld [vmem:[#allocation8 + $0x10] sm:$0xff]   ;;  %v581_v8 = vld [vmem:[#allocation6 + $0x20] sm:$0xff]   ;;  %s438_s27 = sshll.u32 %s736_s3, 4  ;;  %s439_s27 = int_to_ptr.vmem [resolvable:$true] %s438_s27 }
  0x4c   :  { %507 = vmatpush3.bf16.msra.mxu0 %v577_v1  ;;  %527 = vmatpush3.bf16.msra.mxu1 %v584_v4  ;;  %v582_v9 = vld [vmem:[#allocation6 + $0x28] sm:$0xff]   ;;  %v589_v10 = vld [vmem:[#allocation8 + $0x18] sm:$0xff]   ;;  %v590_v11 = vld [vmem:[#allocation8 + $0x20] sm:$0xff]   ;;  %s698_s28 = scalar_lea.vmem %s439_s27, 256  ;;  %p703_p5 = scmp.lt.s32.totalorder %s439_s27, %s439_s27 }
  0x4d   :  { %508 = vmatprep.subr.bf16.mxu0 %v734_v0  ;;  %528 = vmatprep.subr.bf16.mxu1 %v734_v0  ;;  %v583_v12 = vld [vmem:[#allocation6 + $0x30] sm:$0xff]   ;;  %v591_v13 = vld [vmem:[#allocation8 + $0x28] sm:$0xff]   ;;  %v585_v14 = vld [vmem:[#allocation6 + $0x38] sm:$0xff]   ;;  %p699_p4 = scmp.ne.s32.totalorder %s439_s27, %s698_s28  ;;  %p704_p6 = scmp.lt.s32.totalorder %s698_s28, %s698_s28 }
  0x4e   :  { %v587_v15 = vld [vmem:[#allocation3] sm:$0xff]   ;;  %v592_v16 = vld [vmem:[#allocation8 + $0x30] sm:$0xff]   ;;  %v594_v18 = vld [vmem:[#allocation9] sm:$0xff]  }
  0x4f   :  { %v593_v17 = vld [vmem:[#allocation8 + $0x38] sm:$0xff]   ;;  %v595_v19 = vld [vmem:[#allocation9 + $0x8] sm:$0xff]   ;;  %v596_v20 = vld [vmem:[#allocation9 + $0x10] sm:$0xff]   ;;  %p705_p7 = por %p704_p6, %p703_p5 }
  0x50   :  { %509 = vmatpush3.bf16.msra.mxu0 %v578_v2  ;;  %529 = vmatpush3.bf16.msra.mxu1 %v586_v5  ;;  %v597_v21 = vld [vmem:[#allocation9 + $0x18] sm:$0xff]   ;;  %v598_v22 = vld [vmem:[#allocation9 + $0x20] sm:$0xff]   ;;  %v599_v23 = vld [vmem:[#allocation9 + $0x28] sm:$0xff]  }
  0x51   :  { %510 = vmatprep.subr.bf16.mxu0 %v734_v0  ;;  %530 = vmatprep.subr.bf16.mxu1 %v734_v0  ;;  %v600_v24 = vld [vmem:[#allocation9 + $0x30] sm:$0xff]   ;;  %v601_v25 = vld [vmem:[#allocation9 + $0x38] sm:$0xff]   ;;  %p706_p8 = pnand %p705_p7, %p699_p4 }
  0x54   :  { %511 = vmatpush3.bf16.msra.mxu0 %v579_v3  ;;  %531 = vmatpush3.bf16.msra.mxu1 %v588_v7 }
  0x55   :  { %512 = vmatprep.subr.bf16.mxu0 %v734_v0  ;;  %532 = vmatprep.subr.bf16.mxu1 %v734_v0 }
  0x58   :  { %513 = vmatpush3.bf16.msra.mxu0 %v580_v6  ;;  %533 = vmatpush3.bf16.msra.mxu1 %v589_v10 }
  0x59   :  { %514 = vmatprep.subr.bf16.mxu0 %v734_v0  ;;  %534 = vmatprep.subr.bf16.mxu1 %v734_v0 }
  0x5c   :  { %515 = vmatpush3.bf16.msra.mxu0 %v581_v8  ;;  %535 = vmatpush3.bf16.msra.mxu1 %v590_v11 }
  0x5d   :  { %516 = vmatprep.subr.bf16.mxu0 %v734_v0  ;;  %536 = vmatprep.subr.bf16.mxu1 %v734_v0 }
  0x60   :  { %517 = vmatpush3.bf16.msra.mxu0 %v582_v9  ;;  %537 = vmatpush3.bf16.msra.mxu1 %v591_v13 }
  0x61   :  { %518 = vmatprep.subr.bf16.mxu0 %v734_v0  ;;  %538 = vmatprep.subr.bf16.mxu1 %v734_v0 }
  0x64   :  { %519 = vmatpush3.bf16.msra.mxu0 %v583_v12  ;;  %539 = vmatpush3.bf16.msra.mxu1 %v592_v16 }
  0x65   :  { %520 = vmatprep.subr.bf16.mxu0 %v734_v0  ;;  %540 = vmatprep.subr.bf16.mxu1 %v734_v0 }
  0x68   :  { %521 = vmatpush3.bf16.msra.mxu0 %v585_v14  ;;  %541 = vmatpush3.bf16.msra.mxu1 %v593_v17 }
  0x69   :  { %546 = vmatprep.subr.bf16.mxu0 %v734_v0 }
  0x6b   :  { %523 = vmatmul.mubr.bf16.vlgmr.msra.gmra.mrb[0].mxu0 %v587_v15  ;;  %543 = vmatmul.mubr.bf16.vlgmr.msra.gmra.mrb[0].mxu1 %v587_v15 }
  0x6c   :  { %562 = vmatprep.mubr.msk.bf16.mxu0 %vm735_vm0, %v734_v0  ;;  %547 = vmatpush3.bf16.msra.mxu0 %v594_v18 }
  0x6d   :  { %548 = vmatprep.subr.bf16.mxu0 %v734_v0 }
  0x70   :  { %549 = vmatpush3.bf16.msra.mxu0 %v595_v19 }
  0x71   :  { %550 = vmatprep.subr.bf16.mxu0 %v734_v0 }
  0x74   :  { %551 = vmatpush3.bf16.msra.mxu0 %v596_v20 }
  0x75   :  { %552 = vmatprep.subr.bf16.mxu0 %v734_v0 }
  0x78   :  { %553 = vmatpush3.bf16.msra.mxu0 %v597_v21 }
  0x79   :  { %554 = vmatprep.subr.bf16.mxu0 %v734_v0 }
  0x7c   :  { %555 = vmatpush3.bf16.msra.mxu0 %v598_v22 }
  0x7d   :  { %556 = vmatprep.subr.bf16.mxu0 %v734_v0 }
  0x80   :  { %557 = vmatpush3.bf16.msra.mxu0 %v599_v23 }
  0x81   :  { %558 = vmatprep.subr.bf16.mxu0 %v734_v0 }
  0x84   :  { %559 = vmatpush3.bf16.msra.mxu0 %v600_v24 }
  0x85   :  { %560 = vmatprep.subr.bf16.mxu0 %v734_v0 }
  0x88   :  { %561 = vmatpush3.bf16.msra.mxu0 %v601_v25 }
 0x13e   :  { %v186_v26 = vpop.f32.mrb[0].mxu0  ;;  %v291_v32 = vpop.f32.mrb[0].mxu1 }
 0x13f   :  { %v469_v27 = vmul.f32 -1.442695, %v186_v26  ;;  %v524_v28 = vpop.f32.mrb[1].mxu0  ;;  %v544_v33 = vpop.f32.mrb[1].mxu1 }
 0x140   :  { %v189_v29 = vpop.f32.mrb[2].mxu0  ;;  %v294_v34 = vpop.f32.mrb[2].mxu1 }
 0x141   :  { %602 = vpow2.f32 %v469_v27  ;;  %v470_v30 = vmul.f32 -1.442695, %v189_v29  ;;  %v525_v31 = vpop.f32.mrb[3].mxu0  ;;  %v545_v35 = vpop.f32.mrb[3].mxu1 }
 0x143   :  { %604 = vpow2.f32 %v470_v30 }
 0x14b   :  { %v603_v36 = vpop.eup %602 }
 0x14c   :  { %v304_v37 = vadd.f32 1.0, %v603_v36 }
 0x14d   :  { %v605_v38 = vpop.eup %604 }
 0x14e   :  { %606 = vrcp.f32 %v304_v37  ;;  %v305_v39 = vadd.f32 1.0, %v605_v38 }
 0x150   :  { %608 = vrcp.f32 %v305_v39 }
 0x158   :  { %v607_v40 = vpop.eup %606 }
 0x159   :  { %v310_v41 = vmul.f32 %v607_v40, %v186_v26 }
 0x15a   :  { %v609_v42 = vpop.eup %608 }
 0x15b   :  { %v311_v43 = vmul.f32 %v609_v42, %v189_v29  ;;  %v312_v44 = vmul.f32 %v310_v41, %v291_v32 }
 0x15d   :  { %v313_v45 = vmul.f32 %v311_v43, %v294_v34 }
 0x15f   :  { %v316_v46 = vpack.c.bf16 %v313_v45, %v312_v44 }
 0x161   :  { %563 = vmatmul.mubr.bf16.vlgmr.msra.gmra.mrb[4].mxu0 %v316_v46 }
 0x234   :  { %v415_v47 = vpop.f32.mrb[4].mxu0 }
 0x235   :  { %431 = vst [vmem:[#allocation11] sm:$0xff] %v415_v47  ;;  %v564_v48 = vpop.f32.mrb[5].mxu0 }
 0x236   :  { %v418_v49 = vpop.f32.mrb[6].mxu0 }
 0x237   :  { %432 = vst [vmem:[#allocation11 + $0x8] sm:$0xff] %v418_v49  ;;  %v565_v50 = vpop.f32.mrb[7].mxu0 }
 0x238   :  { %709 = shalt.err (!%p706_p8)
}
 0x239   :  { %s710_s13 = scalar_lea.hbm %s884_s4, 256 }
 0x23a   :  { %p711_p9 = scmp.ne.s32.totalorder %s884_s4, %s710_s13  ;;  %p714_p10 = scmp.lt.u32.totalorder %s710_s13, %s884_s4 }
 0x23c   :  { %p716_p11 = pnand %p714_p10, %p711_p9 }
 0x23e   :  { %719 = shalt.err (!%p716_p11)
}
 0x23f   :  { %s737_s19 = smov 128   ;;  %s738_s20 = smov 8  }
 0x240   :  { %444 = dma.vmem_to_hbm [thread:$0]  %s439_s27, 256, %s884_s4, [#allocation5], %s737_s19, %s737_s19, %s738_s20  }
 0x241   :  { %726 = dma.done.wait [#allocation5], 256  }
 0x242   :  { %727 = vsyncadd [#allocation5], 4294967040 }
 0x243   :  { %448 = vsyncpa [#allocation4], 1 }
 0x244   :  { %449 = vsyncpa [#allocation7], 1 }
 0x245   :  { %450 = vsyncpa [#allocation10], 1 }
 0x246   :  { %451 = vsyncpa [#allocation5], 1 }

</bundles_post_ra>
